<compile_context>
chip_gen: v7x
topology: tpu7x:2x2x1
jax: 0.10.0
libtpu: 0.0.40
codegen_flags: <defaults>
</compile_context>

<pallas_src>
import jax
import jax.numpy as jnp
from jax.experimental import pallas as pl
from jax.experimental.pallas import tpu as pltpu


# ----------------------------------------------------------------------------
# Pallas kernel: block of TM Fourier modes, packed complex channel mix.
#   y1 = xr @ [wr|wi] = [xr@wr | xr@wi]
#   y2 = xi @ [wr|wi] = [xi@wr | xi@wi]
#   out = [or | oi] = y1 + [-(xi@wi) | +(xi@wr)]   (swap halves of y2, negate one)
# ----------------------------------------------------------------------------
def _cmul_kernel(xp_ref, wt_ref, op_ref):
    ci = xp_ref.shape[-1] // 2
    co = op_ref.shape[-1] // 2
    x = xp_ref[...]                      # (tm, B, 2Ci)
    w = wt_ref[...]                      # (tm, Ci, 2Co)
    dn = (((2,), (1,)), ((0,), (0,)))    # contract Ci, batch over modes
    y1 = jax.lax.dot_general(x[..., :ci], w, dn, preferred_element_type=jnp.float32)
    y2 = jax.lax.dot_general(x[..., ci:], w, dn, preferred_element_type=jnp.float32)
    # Complex combine: equivalent to sign * pltpu.roll(y2, co, axis=-1); the
    # lane shuffle lands on the XLU slot, the add/neg on the VPU slot.
    comb = jnp.concatenate([-y2[..., co:], y2[..., :co]], axis=-1)
    op_ref[...] = (y1 + comb).astype(op_ref.dtype)


def spectral_mix_pallas(xp, w_top, *, tile_budget_bytes=20 * 1024 * 1024):
    """Batched per-mode complex mix: (M,B,2Ci) x (M,Ci,2Co) -> (M,B,2Co) f32."""
    M, B, two_ci = xp.shape
    Mw, ci, two_co = w_top.shape
    assert M == Mw and two_ci == 2 * ci

    # (8,128)-tiled VMEM bytes for a single-mode tile of a given operand.
    def _tile_bytes(sub, lane, dtype):
        it = jnp.dtype(dtype).itemsize
        sub_m = max(1, 32 // it)          # 8 sublanes f32 / 16 bf16 / 32 int8
        return (pl.cdiv(sub, sub_m) * sub_m) * (pl.cdiv(lane, 128) * 128) * it

    # Double-buffered (x2) footprint per mode: x tile + w tile + out tile.
    per_mode = 2 * (_tile_bytes(B, two_ci, xp.dtype)
                    + _tile_bytes(ci, two_co, w_top.dtype)
                    + _tile_bytes(B, two_co, jnp.float32))

    # tm must divide M exactly (no pad / slice HBM copies around the kernel).
    # Prefer an even grid of >= 4 steps (v7x megacore balance + pipelining);
    # otherwise take the largest divisor fitting the tile budget.
    divisors = [d for d in range(1, M + 1) if M % d == 0]
    fitting = [d for d in divisors if d * per_mode <= tile_budget_bytes] or [1]
    even4 = [d for d in fitting if (M // d) >= 4 and (M // d) % 2 == 0]
    tm = max(even4) if even4 else max(fitting)
    grid_n = M // tm

    tile_bytes = tm * per_mode
    # Explicit scoped-VMEM request: >=16 MiB, <=28 MiB (leaves headroom even on
    # v7x's 64 MiB), but never below what the double-buffered tiles need.
    vmem_bytes = int(max(16 * 1024 * 1024,
                         min(28 * 1024 * 1024, tile_bytes + 4 * 1024 * 1024)))
    vmem_bytes = max(vmem_bytes, int(tile_bytes) + 2 * 1024 * 1024)

    return pl.pallas_call(
        _cmul_kernel,
        out_shape=jax.ShapeDtypeStruct((M, B, two_co), jnp.float32),
        grid_spec=pltpu.PrefetchScalarGridSpec(
            num_scalar_prefetch=0,
            grid=(grid_n,),
            in_specs=[
                pl.BlockSpec((tm, B, two_ci), lambda m: (m, 0, 0)),
                pl.BlockSpec((tm, ci, two_co), lambda m: (m, 0, 0)),
            ],
            out_specs=pl.BlockSpec((tm, B, two_co), lambda m: (m, 0, 0)),
        ),
        compiler_params=pltpu.CompilerParams(
            dimension_semantics=("parallel",),
            vmem_limit_bytes=vmem_bytes,
        ),
    )(xp, w_top)


# ----------------------------------------------------------------------------
# External `transformer` dependency: VFT-style truncated matrix DFT.
#   forward : (B, C, H, W) real -> (B, C, 2*kX, kY) complex (x-modes 0..kX-1, -kX..-1)
#   inverse : Re(adjoint) / (H*W).
# forward_packed / inverse_modes are the real/imag-split fast path used by the
# layer (no complex64 intermediates on the hot path).
# ----------------------------------------------------------------------------
class VFTTransformer:
    def __init__(self, H, W, kX, kY):
        self.H, self.W = H, W
        kx = jnp.concatenate([jnp.arange(kX), jnp.arange(-kX, 0)]).astype(jnp.float32)
        ky = jnp.arange(kY).astype(jnp.float32)
        h = jnp.arange(H).astype(jnp.float32)
        w = jnp.arange(W).astype(jnp.float32)
        ax = -2.0 * jnp.pi * kx[:, None] * h[None, :] / H      # (2kX, H)
        ay = -2.0 * jnp.pi * ky[:, None] * w[None, :] / W      # (kY, W)
        self.FxR, self.FxI = jnp.cos(ax), jnp.sin(ax)
        self.FyR, self.FyI = jnp.cos(ay), jnp.sin(ay)
        self.norm = 1.0 / float(H * W)

    # ---- real/imag-split fast path ----
    def forward_packed(self, x, dtype=jnp.float32):
        """x (B,C,H,W) real -> (2kX*kY, B, 2C) packed [xr | xi] in `dtype`."""
        a = jnp.einsum('mh,bchw->mbcw', self.FxR, x)
        b = jnp.einsum('mh,bchw->mbcw', self.FxI, x)
        xr = (jnp.einsum('mbcw,nw->mnbc', a, self.FyR)
              - jnp.einsum('mbcw,nw->mnbc', b, self.FyI))
        xi = (jnp.einsum('mbcw,nw->mnbc', a, self.FyI)
              + jnp.einsum('mbcw,nw->mnbc', b, self.FyR))
        Mx, My, B, C = xr.shape
        return jnp.concatenate([xr, xi], axis=-1).reshape(Mx * My, B, 2 * C).astype(dtype)

    def inverse_modes(self, o_r, o_i):
        """(o_r, o_i) each (2kX, kY, B, C) -> (B, C, H, W) f32 (Re(adjoint)/(H*W))."""
        p = (jnp.einsum('mh,mnbc->hnbc', self.FxR, o_r)
             + jnp.einsum('mh,mnbc->hnbc', self.FxI, o_i))
        q = (jnp.einsum('mh,mnbc->hnbc', self.FxR, o_i)
             - jnp.einsum('mh,mnbc->hnbc', self.FxI, o_r))
        y = (jnp.einsum('hnbc,nw->bchw', p, self.FyR)
             + jnp.einsum('hnbc,nw->bchw', q, self.FyI))
        return (self.norm * y).astype(jnp.float32)

    # ---- complex interface (spec parity / reference checks only) ----
    def forward(self, x):
        Fx = (self.FxR + 1j * self.FxI).astype(jnp.complex64)
        Fy = (self.FyR + 1j * self.FyI).astype(jnp.complex64)
        return jnp.einsum('mh,bchw,nw->bcmn', Fx, x.astype(jnp.complex64), Fy)

    def inverse(self, out_ft):
        Fx = (self.FxR + 1j * self.FxI).astype(jnp.complex64)
        Fy = (self.FyR + 1j * self.FyI).astype(jnp.complex64)
        y = jnp.einsum('mh,bcmn,nw->bchw', jnp.conj(Fx), out_ft, jnp.conj(Fy))
        return (self.norm * jnp.real(y)).astype(jnp.float32)


# ----------------------------------------------------------------------------
# SpectralConv2d_dse
# ----------------------------------------------------------------------------
class SpectralConv2dDSE:
    def __init__(self, dv, kX, kY, transformer, key, compute_dtype=jnp.bfloat16):
        self.kX, self.kY, self.channel = kX, kY, dv
        scale = 1.0 / (dv * dv)
        k1, k2, k3, k4 = jax.random.split(key, 4)
        shape = (dv, dv, kX, kY)
        # matches torch: scale * rand(..., dtype=cfloat)  (uniform [0,1) real & imag)
        self.weights1 = (scale * jax.random.uniform(k1, shape)
                         + 1j * scale * jax.random.uniform(k2, shape)).astype(jnp.complex64)
        self.weights2 = (scale * jax.random.uniform(k3, shape)
                         + 1j * scale * jax.random.uniform(k4, shape)).astype(jnp.complex64)
        self.transformer = transformer
        self.compute_dtype = compute_dtype

        # out_ft[:, :, :kX] uses weights1, out_ft[:, :, -kX:] uses weights2; the VFT
        # produces exactly 2*kX x-modes so both halves fuse by concatenating along
        # the x-mode axis.  Cache ONLY the top half [wr | wi] (non-redundant) of the
        # packed real weight, modes-major, once in __init__ (never per forward).
        w_cat = jnp.concatenate([self.weights1, self.weights2], axis=2)  # (Ci, Co, 2kX, kY)
        Ci, Co = dv, dv
        M = 2 * kX * kY
        wr = jnp.real(w_cat).transpose(2, 3, 0, 1).reshape(M, Ci, Co)
        wi = jnp.imag(w_cat).transpose(2, 3, 0, 1).reshape(M, Ci, Co)
        self.w_top = jnp.concatenate([wr, wi], axis=-1).astype(compute_dtype)  # (M, Ci, 2Co)

        # jit the whole forward so packing/cast fuses into the DFT einsums.
        self.forward = jax.jit(self._forward)

    def _forward(self, x):
        C = self.channel
        xp = self.transformer.forward_packed(x, self.compute_dtype)   # (M, B, 2C)
        op = spectral_mix_pallas(xp, self.w_top)                      # (M, B, 2C) f32
        o = op.reshape(2 * self.kX, self.kY, -1, 2 * C)
        return self.transformer.inverse_modes(o[..., :C], o[..., C:])  # (B, C, H, W) f32


if __name__ == "__main__":
    B, C, H, W = 2, 4, 16, 16
    kX, kY = 6, 6

    key = jax.random.PRNGKey(0)
    kx_, kw_ = jax.random.split(key)
    x = jax.random.normal(kx_, (B, C, H, W), dtype=jnp.float32)

    transformer = VFTTransformer(H, W, kX, kY)
    # same key -> identical weights; f32 operands for tight checks, default bf16 for perf
    layer_f32 = SpectralConv2dDSE(C, kX, kY, transformer, kw_, compute_dtype=jnp.float32)
    layer_b16 = SpectralConv2dDSE(C, kX, kY, transformer, kw_)

    # Pure complex reference path (no Pallas): forward -> einsum -> inverse.
    x_ft = transformer.forward(x)                                   # (B, C, 2kX, kY) c64
    w_cat = jnp.concatenate([layer_f32.weights1, layer_f32.weights2], axis=2)
    ref_ft = jnp.einsum('bixy,ioxy->boxy', x_ft, w_cat)
    out_ref = transformer.inverse(ref_ft)

    # 1) Pallas packed channel-mix (f32 operands) vs complex einsum reference.
    xp = transformer.forward_packed(x, jnp.float32)
    op = spectral_mix_pallas(xp, layer_f32.w_top)
    o = op.reshape(2 * kX, kY, B, 2 * C)
    got_ft = (o[..., :C] + 1j * o[..., C:]).transpose(2, 3, 0, 1)
    assert jnp.allclose(got_ft, ref_ft, atol=1e-3, rtol=1e-3)

    # 2) Full fast-path forward (f32 operands) vs pure complex reference path.
    out_f32 = jax.block_until_ready(layer_f32.forward(x))
    assert out_f32.shape == (B, C, H, W) and out_f32.dtype == jnp.float32
    assert jnp.allclose(out_f32, out_ref, atol=1e-3, rtol=1e-3)

    # 3) Default bf16-operand path (f32 accumulation/output) — looser tolerance.
    out_b16 = jax.block_until_ready(layer_b16.forward(x))
    assert out_b16.shape == (B, C, H, W) and out_b16.dtype == jnp.float32
    assert jnp.allclose(out_b16, out_ref, atol=5e-2, rtol=5e-2)

    print("KERNEL_OK")
</pallas_src>

<mosaic_0001>
module attributes {stable_mosaic.version = 11 : i64} {
  func.func @_cmul_kernel(%arg0: i32, %arg1: memref<18x2x8xf32, #tpu.memory_space<vmem>>, %arg2: memref<18x4x8xf32, #tpu.memory_space<vmem>>, %arg3: memref<18x2x8xf32, #tpu.memory_space<vmem>>) attributes {dimension_semantics = [#tpu.dimension_semantics<parallel>], iteration_bounds = array<i64: 4>, scalar_prefetch = 0 : i64, scratch_operands = 0 : i64, tpu.core_type = #tpu.core_type<tc>, window_params = [{transform_indices = @transform_0, window_bounds = array<i64: 18, 2, 8>}, {transform_indices = @transform_1, window_bounds = array<i64: 18, 4, 8>}, {transform_indices = @transform_2, window_bounds = array<i64: 18, 2, 8>}]} {
    %c0 = arith.constant 0 : index
    %c0_0 = arith.constant 0 : index
    %c0_1 = arith.constant 0 : index
    %0 = vector.load %arg1[%c0, %c0_0, %c0_1] : memref<18x2x8xf32, #tpu.memory_space<vmem>>, vector<18x2x8xf32>
    %c0_2 = arith.constant 0 : index
    %c0_3 = arith.constant 0 : index
    %c0_4 = arith.constant 0 : index
    %1 = vector.load %arg2[%c0_2, %c0_3, %c0_4] : memref<18x4x8xf32, #tpu.memory_space<vmem>>, vector<18x4x8xf32>
    %2 = vector.extract_strided_slice %0 {offsets = [0, 0, 0], sizes = [18, 2, 4], strides = [1, 1, 1]} : vector<18x2x8xf32> to vector<18x2x4xf32>
    %cst = arith.constant dense<0.000000e+00> : vector<18x2x8xf32>
    %3 = tpu.matmul %2, %1, %cst {dimension_numbers = #tpu.dot_dimension_numbers<[2], [1], [1], [2], [0, 0, 0, 1, 1, 2], [0], [0]>} : vector<18x2x4xf32>, vector<18x4x8xf32>, vector<18x2x8xf32> -> vector<18x2x8xf32>
    %4 = vector.extract_strided_slice %0 {offsets = [0, 0, 4], sizes = [18, 2, 4], strides = [1, 1, 1]} : vector<18x2x8xf32> to vector<18x2x4xf32>
    %cst_5 = arith.constant dense<0.000000e+00> : vector<18x2x8xf32>
    %5 = tpu.matmul %4, %1, %cst_5 {dimension_numbers = #tpu.dot_dimension_numbers<[2], [1], [1], [2], [0, 0, 0, 1, 1, 2], [0], [0]>} : vector<18x2x4xf32>, vector<18x4x8xf32>, vector<18x2x8xf32> -> vector<18x2x8xf32>
    %6 = vector.extract_strided_slice %5 {offsets = [0, 0, 4], sizes = [18, 2, 4], strides = [1, 1, 1]} : vector<18x2x8xf32> to vector<18x2x4xf32>
    %cst_6 = arith.constant 0.000000e+00 : f32
    %7 = vector.broadcast %cst_6 : f32 to vector<18x2x4xf32>
    %8 = arith.subf %7, %6 : vector<18x2x4xf32>
    %9 = vector.extract_strided_slice %5 {offsets = [0, 0, 0], sizes = [18, 2, 4], strides = [1, 1, 1]} : vector<18x2x8xf32> to vector<18x2x4xf32>
    %10 = tpu.concatenate %8, %9 in 2 : vector<18x2x4xf32>, vector<18x2x4xf32> -> vector<18x2x8xf32>
    %11 = arith.addf %3, %10 : vector<18x2x8xf32>
    %c0_7 = arith.constant 0 : index
    %c0_8 = arith.constant 0 : index
    %c0_9 = arith.constant 0 : index
    %12 = vector.load %arg3[%c0_7, %c0_8, %c0_9] : memref<18x2x8xf32, #tpu.memory_space<vmem>>, vector<18x2x8xf32>
    tpu.vector_store %arg3[%c0_7, %c0_8, %c0_9], %11 {strides = array<i32>} : memref<18x2x8xf32, #tpu.memory_space<vmem>>, vector<18x2x8xf32>,
    return
  }
  func.func @transform_0(%arg0: i32) -> (i32, i32, i32) {
    %c0_i32 = arith.constant 0 : i32
    %c0_i32_0 = arith.constant 0 : i32
    %c0_i32_1 = arith.constant 0 : i32
    return %arg0, %c0_i32, %c0_i32_0 : i32, i32, i32
  }
  func.func @transform_1(%arg0: i32) -> (i32, i32, i32) {
    %c0_i32 = arith.constant 0 : i32
    %c0_i32_0 = arith.constant 0 : i32
    %c0_i32_1 = arith.constant 0 : i32
    return %arg0, %c0_i32, %c0_i32_0 : i32, i32, i32
  }
  func.func @transform_2(%arg0: i32) -> (i32, i32, i32) {
    %c0_i32 = arith.constant 0 : i32
    %c0_i32_0 = arith.constant 0 : i32
    %c0_i32_1 = arith.constant 0 : i32
    return %arg0, %c0_i32, %c0_i32_0 : i32, i32, i32
  }
}

</mosaic_0001>

<bundles_post_ra>
// kernel: tpu_custom_call.1
= control target key start
LH: loop header
LB: loop body
LE: loop exit
PB: predicated region body
PF: predicated region fallthrough
CT: control target
= control target key end

     0   :  { %s3547_s9 = smov 0   ;;  %s4111_s0 = inlined_call_operand.vmem [shape: f32[72,2,8], index: 0, kind: input, shape index: {}]   ;;  %s4112_s1 = inlined_call_operand.vmem [shape: f32[72,4,8], index: 1, kind: input, shape index: {}]   ;;  %s4113_s2 = inlined_call_operand.vmem [shape: f32[72,2,8], index: 2, kind: output, shape index: {}]  }
   0x1 LB: > { %s3174_s10 = sadd.s32 4294967295, %s3526_s9   ;;  %p3178_p0 = scmp.ge.s32.totalorder %s3526_s9, 1  ;;  %s3526_s9 = sphi %s3547_s9, %s12_s9  }
   0x2   : > { %p124_p1 = scmp.lt.s32.totalorder %s3526_s9, 5 }
   0x4   : > { %p125_p2 = pnand %p3178_p0, %p124_p1 }
   0x5   : > { %s151_s11 = smul.u32 (!%p125_p2), 18, %s3174_s10  ;;  %v3528_v0 = vmov (!%p125_p2), 0.0   ;;  %vm3529_vm0 = vmmov (!%p125_p2), 0   ;;  %s3530_s17 = smov (!%p125_p2), 124   ;;  %vm211_vm1 = vcmask (!%p125_p2), 1043456   ;;  %vm208_vm2 = vcmask (!%p125_p2), 31744  }
   0x6   : > { %128 = sbr.rel (%p125_p2) target bundleno = 535 (0x217), region = 28  ;;  %3328 = vmatprep.subr.mxu0 (!%p125_p2), %v3528_v0  ;;  %3330 = vmatprep.mubr.msk.f32.mxu0 (!%p125_p2), %vm3529_vm0, %v3528_v0  ;;  %s3531_s21 = smov (!%p125_p2), 4   ;;  %vm3087_vm3 = vcmask (!%p125_p2), 58368  }
   0x7   : > { %p152_p3 = scmp.lt.s32.totalorder (!%p125_p2), %s151_s11, 71  ;;  %3333 = vmatprep.subr.mxu1 (!%p125_p2), %v3528_v0  ;;  %3335 = vmatprep.mubr.msk.f32.mxu1 (!%p125_p2), %vm3529_vm0, %v3528_v0 }
   0xd   : > { %s4115_s11 = smov (!%p152_p3, %s151_s11), 71 }
   0xe   : > { %s3179_s12 = sshll.u32 %s4115_s11, 1  ;;  %s3180_s16 = sshll.u32 %s4115_s11, 2 }
   0xf   : > { %s3569_s15 = scalar_lea.vmem %s4111_s0, %s3179_s12  ;;  %s3591_s20 = scalar_lea.vmem %s4112_s1, %s3180_s16 }
  0x10   : > { %v3572_v1 = vld [vmem:[%s3569_s15] sm:$0x3]  ;;  %v3575_v2 = vld [vmem:[%s3569_s15 + $0x4] sm:$0x3]  ;;  %v3583_v3 = vld [vmem:[%s3569_s15 + $0x2] sm:$0x3]  ;;  %s4034_s24 = scalar_lea.vmem %s4113_s2, %s3179_s12 }
  0x11   : > { %206 = vrot.lane.b32.xlu0 %v3572_v1, %s3530_s17  ;;  %364 = vrot.lane.b32.xlu1 %v3575_v2, %s3530_s17  ;;  %v3586_v4 = vld [vmem:[%s3569_s15 + $0x6] sm:$0x3]  ;;  %v3598_v5 = vld [vmem:[%s3569_s15 + $0x8] sm:$0x3] }
  0x12   : > { %v3601_v6 = vld [vmem:[%s3569_s15 + $0xa] sm:$0x3]  ;;  %v3604_v7 = vld [vmem:[%s3591_s20] sm:$0xf]  ;;  %v3609_v8 = vld [vmem:[%s3591_s20 + $0x4] sm:$0xf] }
  0x13   : > { %3329 = vmatpush3.msk.msra.mxu0 %vm211_vm1, %v3604_v7  ;;  %3334 = vmatpush3.msk.msra.mxu1 %vm211_vm1, %v3609_v8  ;;  %v3619_v9 = vld [vmem:[%s3569_s15 + $0xc] sm:$0x3]  ;;  %v3622_v10 = vld [vmem:[%s3569_s15 + $0xe] sm:$0x3]  ;;  %v3630_v11 = vld [vmem:[%s3569_s15 + $0x10] sm:$0x3] }
  0x14   : > { %3338 = vmatprep.subr.mxu0 %v3528_v0  ;;  %3343 = vmatprep.subr.mxu1 %v3528_v0  ;;  %v3633_v12 = vld [vmem:[%s3569_s15 + $0x12] sm:$0x3]  ;;  %v3640_v13 = vld [vmem:[%s3569_s15 + $0x14] sm:$0x3]  ;;  %v3643_v14 = vld [vmem:[%s3569_s15 + $0x16] sm:$0x3] }
  0x15   : > { %286 = vrot.lane.b32.xlu0 %v3583_v3, %s3530_s17  ;;  %442 = vrot.lane.b32.xlu1 %v3586_v4, %s3530_s17  ;;  %v3650_v15 = vld [vmem:[%s3569_s15 + $0x18] sm:$0x3]  ;;  %v3653_v16 = vld [vmem:[%s3569_s15 + $0x1a] sm:$0x3] }
  0x16   : > { %v3660_v17 = vld [vmem:[%s3569_s15 + $0x1c] sm:$0x3]  ;;  %v3663_v18 = vld [vmem:[%s3569_s15 + $0x1e] sm:$0x3]  ;;  %v3670_v19 = vld [vmem:[%s3569_s15 + $0x20] sm:$0x3] }
  0x17   : > { %v3673_v20 = vld [vmem:[%s3569_s15 + $0x22] sm:$0x3]  ;;  %v3680_v21 = vld [vmem:[%s3591_s20 + $0x8] sm:$0xf]  ;;  %v3688_v24 = vld [vmem:[%s3591_s20 + $0xc] sm:$0xf] }
  0x18   : > { %v3692_v26 = vld [vmem:[%s3591_s20 + $0x10] sm:$0xf]  ;;  %v3705_v28 = vld [vmem:[%s3591_s20 + $0x14] sm:$0xf]  ;;  %v3710_v30 = vld [vmem:[%s3591_s20 + $0x18] sm:$0xf] }
  0x19   : > { %520 = vrot.lane.b32.xlu0 %v3598_v5, %s3530_s17  ;;  %598 = vrot.lane.b32.xlu1 %v3601_v6, %s3530_s17  ;;  %v3723_v32 = vld [vmem:[%s3591_s20 + $0x1c] sm:$0xf]  ;;  %v3728_v34 = vld [vmem:[%s3591_s20 + $0x20] sm:$0xf] }
  0x1a   : > { %v3741_v36 = vld [vmem:[%s3591_s20 + $0x24] sm:$0xf]  ;;  %v3746_v38 = vld [vmem:[%s3591_s20 + $0x28] sm:$0xf]  ;;  %v3759_v40 = vld [vmem:[%s3591_s20 + $0x2c] sm:$0xf] }
  0x1b   : > { %v3764_v42 = vld [vmem:[%s3591_s20 + $0x30] sm:$0xf]  ;;  %v3777_v44 = vld [vmem:[%s3591_s20 + $0x34] sm:$0xf]  ;;  %v3782_v46 = vld [vmem:[%s3591_s20 + $0x38] sm:$0xf] }
  0x1c   : > { %v3795_v48 = vld [vmem:[%s3591_s20 + $0x3c] sm:$0xf]  ;;  %v3800_v50 = vld [vmem:[%s3591_s20 + $0x40] sm:$0xf]  ;;  %v3813_v52 = vld [vmem:[%s3591_s20 + $0x44] sm:$0xf] }
  0x1d   : > { %676 = vrot.lane.b32.xlu0 %v3619_v9, %s3530_s17  ;;  %754 = vrot.lane.b32.xlu1 %v3622_v10, %s3530_s17 }
  0x21   : > { %832 = vrot.lane.b32.xlu0 %v3630_v11, %s3530_s17  ;;  %910 = vrot.lane.b32.xlu1 %v3633_v12, %s3530_s17 }
  0x25   : > { %988 = vrot.lane.b32.xlu0 %v3640_v13, %s3530_s17  ;;  %1066 = vrot.lane.b32.xlu1 %v3643_v14, %s3530_s17 }
  0x29   : > { %1144 = vrot.lane.b32.xlu0 %v3650_v15, %s3530_s17  ;;  %1222 = vrot.lane.b32.xlu1 %v3653_v16, %s3530_s17 }
  0x2d   : > { %1300 = vrot.lane.b32.xlu0 %v3660_v17, %s3530_s17  ;;  %1378 = vrot.lane.b32.xlu1 %v3663_v18, %s3530_s17 }
  0x31   : > { %1456 = vrot.lane.b32.xlu0 %v3670_v19, %s3530_s17  ;;  %1534 = vrot.lane.b32.xlu1 %v3673_v20, %s3530_s17 }
  0x83   : > { %v207_v22 = vpop.permute.xlu0 %206  ;;  %v365_v23 = vpop.permute.xlu1 %364 }
  0x84   : > { %3331 = vmatmul.mubr.msk.f32.vlgmr.msra.gmra.mrb[0].mxu0 %vm208_vm2, %v207_v22 }
  0x85   : > { %3339 = vmatpush3.msk.msra.mxu0 %vm211_vm1, %v3680_v21  ;;  %3340 = vmatprep.mubr.msk.f32.mxu0 %vm3529_vm0, %v3528_v0 }
  0x86   : > { %3348 = vmatprep.subr.mxu0 %v3528_v0 }
  0x87   : > { %v287_v25 = vpop.permute.xlu0 %286  ;;  %v443_v27 = vpop.permute.xlu1 %442 }
  0x88   : > { %3336 = vmatmul.mubr.msk.f32.vlgmr.msra.gmra.mrb[0].mxu1 %vm208_vm2, %v287_v25  ;;  %3341 = vmatmul.mubr.msk.f32.vlgmr.msra.gmra.mrb[2].mxu0 %vm208_vm2, %v365_v23 }
  0x89   : > { %3344 = vmatpush3.msk.msra.mxu1 %vm211_vm1, %v3688_v24  ;;  %3345 = vmatprep.mubr.msk.f32.mxu1 %vm3529_vm0, %v3528_v0 }
  0x8a   : > { %3349 = vmatpush3.msk.msra.mxu0 %vm211_vm1, %v3692_v26  ;;  %3350 = vmatprep.mubr.msk.f32.mxu0 %vm3529_vm0, %v3528_v0 }
  0x8b   : > { %3353 = vmatprep.subr.mxu1 %v3528_v0  ;;  %v521_v29 = vpop.permute.xlu0 %520  ;;  %3358 = vmatprep.subr.mxu0 %v3528_v0  ;;  %v599_v31 = vpop.permute.xlu1 %598 }
  0x8c   : > { %3346 = vmatmul.mubr.msk.f32.vlgmr.msra.gmra.mrb[2].mxu1 %vm208_vm2, %v443_v27  ;;  %3351 = vmatmul.mubr.msk.f32.vlgmr.msra.gmra.mrb[4].mxu0 %vm208_vm2, %v521_v29 }
  0x8d   : > { %3354 = vmatpush3.msk.msra.mxu1 %vm211_vm1, %v3705_v28  ;;  %3355 = vmatprep.mubr.msk.f32.mxu1 %vm3529_vm0, %v3528_v0 }
  0x8e   : > { %3359 = vmatpush3.msk.msra.mxu0 %vm211_vm1, %v3710_v30  ;;  %3360 = vmatprep.mubr.msk.f32.mxu0 %vm3529_vm0, %v3528_v0 }
  0x8f   : > { %3363 = vmatprep.subr.mxu1 %v3528_v0  ;;  %v677_v33 = vpop.permute.xlu0 %676  ;;  %3368 = vmatprep.subr.mxu0 %v3528_v0  ;;  %v755_v35 = vpop.permute.xlu1 %754 }
  0x90   : > { %3356 = vmatmul.mubr.msk.f32.vlgmr.msra.gmra.mrb[4].mxu1 %vm208_vm2, %v599_v31  ;;  %3361 = vmatmul.mubr.msk.f32.vlgmr.msra.gmra.mrb[6].mxu0 %vm208_vm2, %v677_v33 }
  0x91   : > { %3364 = vmatpush3.msk.msra.mxu1 %vm211_vm1, %v3723_v32  ;;  %3365 = vmatprep.mubr.msk.f32.mxu1 %vm3529_vm0, %v3528_v0 }
  0x92   : > { %3369 = vmatpush3.msk.msra.mxu0 %vm211_vm1, %v3728_v34  ;;  %3370 = vmatprep.mubr.msk.f32.mxu0 %vm3529_vm0, %v3528_v0 }
  0x93   : > { %3373 = vmatprep.subr.mxu1 %v3528_v0  ;;  %v833_v37 = vpop.permute.xlu0 %832  ;;  %3378 = vmatprep.subr.mxu0 %v3528_v0  ;;  %v911_v39 = vpop.permute.xlu1 %910 }
  0x94   : > { %3366 = vmatmul.mubr.msk.f32.vlgmr.msra.gmra.mrb[6].mxu1 %vm208_vm2, %v755_v35  ;;  %3371 = vmatmul.mubr.msk.f32.vlgmr.msra.gmra.mrb[8].mxu0 %vm208_vm2, %v833_v37 }
  0x95   : > { %3374 = vmatpush3.msk.msra.mxu1 %vm211_vm1, %v3741_v36  ;;  %3375 = vmatprep.mubr.msk.f32.mxu1 %vm3529_vm0, %v3528_v0 }
  0x96   : > { %3379 = vmatpush3.msk.msra.mxu0 %vm211_vm1, %v3746_v38  ;;  %3380 = vmatprep.mubr.msk.f32.mxu0 %vm3529_vm0, %v3528_v0 }
  0x97   : > { %3383 = vmatprep.subr.mxu1 %v3528_v0  ;;  %v989_v41 = vpop.permute.xlu0 %988  ;;  %3388 = vmatprep.subr.mxu0 %v3528_v0  ;;  %v1067_v43 = vpop.permute.xlu1 %1066 }
  0x98   : > { %3376 = vmatmul.mubr.msk.f32.vlgmr.msra.gmra.mrb[8].mxu1 %vm208_vm2, %v911_v39  ;;  %3381 = vmatmul.mubr.msk.f32.vlgmr.msra.gmra.mrb[10].mxu0 %vm208_vm2, %v989_v41 }
  0x99   : > { %3384 = vmatpush3.msk.msra.mxu1 %vm211_vm1, %v3759_v40  ;;  %3385 = vmatprep.mubr.msk.f32.mxu1 %vm3529_vm0, %v3528_v0 }
  0x9a   : > { %3389 = vmatpush3.msk.msra.mxu0 %vm211_vm1, %v3764_v42  ;;  %3390 = vmatprep.mubr.msk.f32.mxu0 %vm3529_vm0, %v3528_v0 }
  0x9b   : > { %3393 = vmatprep.subr.mxu1 %v3528_v0  ;;  %v1145_v45 = vpop.permute.xlu0 %1144  ;;  %3398 = vmatprep.subr.mxu0 %v3528_v0  ;;  %v1223_v47 = vpop.permute.xlu1 %1222 }
  0x9c   : > { %3386 = vmatmul.mubr.msk.f32.vlgmr.msra.gmra.mrb[10].mxu1 %vm208_vm2, %v1067_v43  ;;  %3391 = vmatmul.mubr.msk.f32.vlgmr.msra.gmra.mrb[12].mxu0 %vm208_vm2, %v1145_v45 }
  0x9d   : > { %3394 = vmatpush3.msk.msra.mxu1 %vm211_vm1, %v3777_v44  ;;  %3395 = vmatprep.mubr.msk.f32.mxu1 %vm3529_vm0, %v3528_v0 }
  0x9e   : > { %3399 = vmatpush3.msk.msra.mxu0 %vm211_vm1, %v3782_v46  ;;  %3400 = vmatprep.mubr.msk.f32.mxu0 %vm3529_vm0, %v3528_v0 }
  0x9f   : > { %3403 = vmatprep.subr.mxu1 %v3528_v0  ;;  %v1301_v49 = vpop.permute.xlu0 %1300  ;;  %3408 = vmatprep.subr.mxu0 %v3528_v0  ;;  %v1379_v51 = vpop.permute.xlu1 %1378 }
  0xa0   : > { %3396 = vmatmul.mubr.msk.f32.vlgmr.msra.gmra.mrb[12].mxu1 %vm208_vm2, %v1223_v47  ;;  %3401 = vmatmul.mubr.msk.f32.vlgmr.msra.gmra.mrb[14].mxu0 %vm208_vm2, %v1301_v49 }
  0xa1   : > { %3404 = vmatpush3.msk.msra.mxu1 %vm211_vm1, %v3795_v48  ;;  %3405 = vmatprep.mubr.msk.f32.mxu1 %vm3529_vm0, %v3528_v0 }
  0xa2   : > { %3409 = vmatpush3.msk.msra.mxu0 %vm211_vm1, %v3800_v50  ;;  %3410 = vmatprep.mubr.msk.f32.mxu0 %vm3529_vm0, %v3528_v0 }
  0xa3   : > { %3413 = vmatprep.subr.mxu1 %v3528_v0  ;;  %v1457_v53 = vpop.permute.xlu0 %1456  ;;  %3418 = vmatprep.subr.mxu0 %v3528_v0  ;;  %v1535_v54 = vpop.permute.xlu1 %1534 }
  0xa4   : > { %3406 = vmatmul.mubr.msk.f32.vlgmr.msra.gmra.mrb[14].mxu1 %vm208_vm2, %v1379_v51  ;;  %3411 = vmatmul.mubr.msk.f32.vlgmr.msra.gmra.mrb[16].mxu0 %vm208_vm2, %v1457_v53 }
  0xa5   : > { %3414 = vmatpush3.msk.msra.mxu1 %vm211_vm1, %v3813_v52  ;;  %3415 = vmatprep.mubr.msk.f32.mxu1 %vm3529_vm0, %v3528_v0 }
  0xa6   : > { %3419 = vmatpush3.msk.msra.mxu0 %vm211_vm1, %v3604_v7  ;;  %3420 = vmatprep.mubr.msk.f32.mxu0 %vm3529_vm0, %v3528_v0 }
  0xa7   : > { %3423 = vmatprep.subr.mxu1 %v3528_v0  ;;  %3428 = vmatprep.subr.mxu0 %v3528_v0 }
  0xa8   : > { %3416 = vmatmul.mubr.msk.f32.vlgmr.msra.gmra.mrb[16].mxu1 %vm208_vm2, %v1535_v54  ;;  %3421 = vmatmul.mubr.msk.f32.vlgmr.msra.gmra.mrb[18].mxu0 %vm208_vm2, %v3572_v1 }
  0xa9   : > { %3424 = vmatpush3.msk.msra.mxu1 %vm211_vm1, %v3609_v8  ;;  %3425 = vmatprep.mubr.msk.f32.mxu1 %vm3529_vm0, %v3528_v0 }
  0xaa   : > { %3429 = vmatpush3.msk.msra.mxu0 %vm211_vm1, %v3680_v21  ;;  %3430 = vmatprep.mubr.msk.f32.mxu0 %vm3529_vm0, %v3528_v0 }
  0xab   : > { %3433 = vmatprep.subr.mxu1 %v3528_v0  ;;  %3438 = vmatprep.subr.mxu0 %v3528_v0 }
  0xac   : > { %3426 = vmatmul.mubr.msk.f32.vlgmr.msra.gmra.mrb[18].mxu1 %vm208_vm2, %v3583_v3  ;;  %3431 = vmatmul.mubr.msk.f32.vlgmr.msra.gmra.mrb[20].mxu0 %vm208_vm2, %v3575_v2 }
  0xad   : > { %3434 = vmatpush3.msk.msra.mxu1 %vm211_vm1, %v3688_v24  ;;  %3435 = vmatprep.mubr.msk.f32.mxu1 %vm3529_vm0, %v3528_v0 }
  0xae   : > { %3439 = vmatpush3.msk.msra.mxu0 %vm211_vm1, %v3692_v26  ;;  %3440 = vmatprep.mubr.msk.f32.mxu0 %vm3529_vm0, %v3528_v0 }
  0xaf   : > { %3443 = vmatprep.subr.mxu1 %v3528_v0  ;;  %3448 = vmatprep.subr.mxu0 %v3528_v0 }
  0xb0   : > { %3436 = vmatmul.mubr.msk.f32.vlgmr.msra.gmra.mrb[20].mxu1 %vm208_vm2, %v3586_v4  ;;  %3441 = vmatmul.mubr.msk.f32.vlgmr.msra.gmra.mrb[22].mxu0 %vm208_vm2, %v3598_v5 }
  0xb1   : > { %3444 = vmatpush3.msk.msra.mxu1 %vm211_vm1, %v3705_v28  ;;  %3445 = vmatprep.mubr.msk.f32.mxu1 %vm3529_vm0, %v3528_v0 }
  0xb2   : > { %3449 = vmatpush3.msk.msra.mxu0 %vm211_vm1, %v3710_v30  ;;  %3450 = vmatprep.mubr.msk.f32.mxu0 %vm3529_vm0, %v3528_v0 }
  0xb3   : > { %3453 = vmatprep.subr.mxu1 %v3528_v0  ;;  %3458 = vmatprep.subr.mxu0 %v3528_v0 }
  0xb4   : > { %3446 = vmatmul.mubr.msk.f32.vlgmr.msra.gmra.mrb[22].mxu1 %vm208_vm2, %v3601_v6  ;;  %3451 = vmatmul.mubr.msk.f32.vlgmr.msra.gmra.mrb[24].mxu0 %vm208_vm2, %v3619_v9 }
  0xb5   : > { %3454 = vmatpush3.msk.msra.mxu1 %vm211_vm1, %v3723_v32  ;;  %3455 = vmatprep.mubr.msk.f32.mxu1 %vm3529_vm0, %v3528_v0 }
  0xb6   : > { %3459 = vmatpush3.msk.msra.mxu0 %vm211_vm1, %v3728_v34  ;;  %3460 = vmatprep.mubr.msk.f32.mxu0 %vm3529_vm0, %v3528_v0 }
  0xb7   : > { %3463 = vmatprep.subr.mxu1 %v3528_v0  ;;  %3468 = vmatprep.subr.mxu0 %v3528_v0 }
  0xb8   : > { %3456 = vmatmul.mubr.msk.f32.vlgmr.msra.gmra.mrb[24].mxu1 %vm208_vm2, %v3622_v10  ;;  %3461 = vmatmul.mubr.msk.f32.vlgmr.msra.gmra.mrb[26].mxu0 %vm208_vm2, %v3630_v11 }
  0xb9   : > { %3464 = vmatpush3.msk.msra.mxu1 %vm211_vm1, %v3741_v36  ;;  %3465 = vmatprep.mubr.msk.f32.mxu1 %vm3529_vm0, %v3528_v0 }
  0xba   : > { %3469 = vmatpush3.msk.msra.mxu0 %vm211_vm1, %v3746_v38  ;;  %3470 = vmatprep.mubr.msk.f32.mxu0 %vm3529_vm0, %v3528_v0 }
  0xbb   : > { %3473 = vmatprep.subr.mxu1 %v3528_v0  ;;  %3478 = vmatprep.subr.mxu0 %v3528_v0 }
  0xbc   : > { %3466 = vmatmul.mubr.msk.f32.vlgmr.msra.gmra.mrb[26].mxu1 %vm208_vm2, %v3633_v12  ;;  %3471 = vmatmul.mubr.msk.f32.vlgmr.msra.gmra.mrb[28].mxu0 %vm208_vm2, %v3640_v13 }
  0xbd   : > { %3474 = vmatpush3.msk.msra.mxu1 %vm211_vm1, %v3759_v40  ;;  %3475 = vmatprep.mubr.msk.f32.mxu1 %vm3529_vm0, %v3528_v0 }
  0xbe   : > { %3479 = vmatpush3.msk.msra.mxu0 %vm211_vm1, %v3764_v42  ;;  %3480 = vmatprep.mubr.msk.f32.mxu0 %vm3529_vm0, %v3528_v0 }
  0xbf   : > { %3483 = vmatprep.subr.mxu1 %v3528_v0  ;;  %3488 = vmatprep.subr.mxu0 %v3528_v0 }
  0xc0   : > { %3476 = vmatmul.mubr.msk.f32.vlgmr.msra.gmra.mrb[28].mxu1 %vm208_vm2, %v3643_v14  ;;  %3481 = vmatmul.mubr.msk.f32.vlgmr.msra.gmra.mrb[30].mxu0 %vm208_vm2, %v3650_v15 }
  0xc1   : > { %3484 = vmatpush3.msk.msra.mxu1 %vm211_vm1, %v3777_v44  ;;  %3485 = vmatprep.mubr.msk.f32.mxu1 %vm3529_vm0, %v3528_v0 }
  0xc2   : > { %3489 = vmatpush3.msk.msra.mxu0 %vm211_vm1, %v3782_v46  ;;  %3490 = vmatprep.mubr.msk.f32.mxu0 %vm3529_vm0, %v3528_v0 }
  0xc3   : > { %3493 = vmatprep.subr.mxu1 %v3528_v0  ;;  %3498 = vmatprep.subr.mxu0 %v3528_v0 }
  0xc4   : > { %3486 = vmatmul.mubr.msk.f32.vlgmr.msra.gmra.mrb[30].mxu1 %vm208_vm2, %v3653_v16  ;;  %3491 = vmatmul.mubr.msk.f32.vlgmr.msra.gmra.mrb[32].mxu0 %vm208_vm2, %v3660_v17 }
  0xc5   : > { %3494 = vmatpush3.msk.msra.mxu1 %vm211_vm1, %v3795_v48  ;;  %3495 = vmatprep.mubr.msk.f32.mxu1 %vm3529_vm0, %v3528_v0 }
  0xc6   : > { %3499 = vmatpush3.msk.msra.mxu0 %vm211_vm1, %v3800_v50  ;;  %3500 = vmatprep.mubr.msk.f32.mxu0 %vm3529_vm0, %v3528_v0 }
  0xc7   : > { %3503 = vmatprep.subr.mxu1 %v3528_v0 }
  0xc8   : > { %3496 = vmatmul.mubr.msk.f32.vlgmr.msra.gmra.mrb[32].mxu1 %vm208_vm2, %v3663_v18  ;;  %3501 = vmatmul.mubr.msk.f32.vlgmr.msra.gmra.mrb[34].mxu0 %vm208_vm2, %v3670_v19 }
  0xc9   : > { %3504 = vmatpush3.msk.msra.mxu1 %vm211_vm1, %v3813_v52  ;;  %3505 = vmatprep.mubr.msk.f32.mxu1 %vm3529_vm0, %v3528_v0 }
  0xcc   : > { %3506 = vmatmul.mubr.msk.f32.vlgmr.msra.gmra.mrb[34].mxu1 %vm208_vm2, %v3673_v20 }
 0x157   : > { %v281_v55 = vpop.f32.mrb[0].mxu0 }
 0x158   : > { %1719 = vrot.lane.b32.xlu0 %v281_v55, %s3531_s21  ;;  %v3332_v56 = vpop.f32.mrb[1].mxu0  ;;  %v1611_v57 = vsub.f32 0.0, %v281_v55 }
 0x15b   : > { %v359_v58 = vpop.f32.mrb[0].mxu1  ;;  %v437_v59 = vpop.f32.mrb[2].mxu0 }
 0x15c   : > { %1647 = vrot.lane.b32.xlu0 %v1611_v57, %s3530_s17  ;;  %1721 = vrot.lane.b32.xlu1 %v359_v58, %s3531_s21  ;;  %v3337_v60 = vpop.f32.mrb[1].mxu1  ;;  %v3342_v61 = vpop.f32.mrb[3].mxu0  ;;  %v1612_v62 = vsub.f32 0.0, %v359_v58  ;;  %v1613_v3 = vsub.f32 0.0, %v437_v59 }
 0x15f   : > { %v515_v63 = vpop.f32.mrb[2].mxu1  ;;  %v593_v0 = vpop.f32.mrb[4].mxu0 }
 0x160   : > { %1723 = vrot.lane.b32.xlu0 %v437_v59, %s3531_s21  ;;  %1649 = vrot.lane.b32.xlu1 %v1612_v62, %s3530_s17  ;;  %v3347_v1 = vpop.f32.mrb[3].mxu1  ;;  %v3352_v2 = vpop.f32.mrb[5].mxu0  ;;  %v1614_v8 = vsub.f32 0.0, %v515_v63  ;;  %v1615_v11 = vsub.f32 0.0, %v593_v0 }
 0x163   : > { %v671_v4 = vpop.f32.mrb[4].mxu1  ;;  %v749_v5 = vpop.f32.mrb[6].mxu0 }
 0x164   : > { %1651 = vrot.lane.b32.xlu0 %v1613_v3, %s3530_s17  ;;  %1725 = vrot.lane.b32.xlu1 %v515_v63, %s3531_s21  ;;  %v3357_v6 = vpop.f32.mrb[5].mxu1  ;;  %v3362_v7 = vpop.f32.mrb[7].mxu0  ;;  %v1616_v18 = vsub.f32 0.0, %v671_v4  ;;  %v1617_v21 = vsub.f32 0.0, %v749_v5 }
 0x167   : > { %v827_v9 = vpop.f32.mrb[6].mxu1  ;;  %v905_v10 = vpop.f32.mrb[8].mxu0 }
 0x168   : > { %1653 = vrot.lane.b32.xlu1 %v1614_v8, %s3530_s17  ;;  %1727 = vrot.lane.b32.xlu0 %v593_v0, %s3531_s21  ;;  %v3367_v12 = vpop.f32.mrb[7].mxu1  ;;  %v3372_v13 = vpop.f32.mrb[9].mxu0  ;;  %v1618_v28 = vsub.f32 0.0, %v827_v9  ;;  %v1619_v31 = vsub.f32 0.0, %v905_v10 }
 0x16b   : > { %v983_v14 = vpop.f32.mrb[8].mxu1  ;;  %v1061_v15 = vpop.f32.mrb[10].mxu0 }
 0x16c   : > { %1729 = vrot.lane.b32.xlu1 %v671_v4, %s3531_s21  ;;  %1655 = vrot.lane.b32.xlu0 %v1615_v11, %s3530_s17  ;;  %v3377_v16 = vpop.f32.mrb[9].mxu1  ;;  %v3382_v17 = vpop.f32.mrb[11].mxu0  ;;  %v1620_v38 = vsub.f32 0.0, %v983_v14  ;;  %v1621_v41 = vsub.f32 0.0, %v1061_v15 }
 0x16f   : > { %v1139_v19 = vpop.f32.mrb[10].mxu1  ;;  %v1217_v20 = vpop.f32.mrb[12].mxu0 }
 0x170   : > { %1657 = vrot.lane.b32.xlu1 %v1616_v18, %s3530_s17  ;;  %1731 = vrot.lane.b32.xlu0 %v749_v5, %s3531_s21  ;;  %v3387_v22 = vpop.f32.mrb[11].mxu1  ;;  %v3392_v23 = vpop.f32.mrb[13].mxu0  ;;  %v1622_v48 = vsub.f32 0.0, %v1139_v19  ;;  %v1623_v51 = vsub.f32 0.0, %v1217_v20 }
 0x173   : > { %v1295_v24 = vpop.f32.mrb[12].mxu1  ;;  %v1373_v25 = vpop.f32.mrb[14].mxu0 }
 0x174   : > { %1733 = vrot.lane.b32.xlu1 %v827_v9, %s3531_s21  ;;  %1659 = vrot.lane.b32.xlu0 %v1617_v21, %s3530_s17  ;;  %v3397_v26 = vpop.f32.mrb[13].mxu1  ;;  %v3402_v27 = vpop.f32.mrb[15].mxu0  ;;  %v1624_v58 = vsub.f32 0.0, %v1295_v24  ;;  %v1625_v61 = vsub.f32 0.0, %v1373_v25 }
 0x177   : > { %v1451_v29 = vpop.f32.mrb[14].mxu1  ;;  %v3964_v30 = vpop.f32.mrb[16].mxu0 }
 0x178   : > { %1661 = vrot.lane.b32.xlu1 %v1618_v28, %s3530_s17  ;;  %1735 = vrot.lane.b32.xlu0 %v905_v10, %s3531_s21  ;;  %v3407_v32 = vpop.f32.mrb[15].mxu1  ;;  %v3412_v33 = vpop.f32.mrb[17].mxu0  ;;  %v1627_v2 = vsub.f32 0.0, %v3964_v30  ;;  %v1626_v5 = vsub.f32 0.0, %v1451_v29 }
 0x17b   : > { %v3968_v34 = vpop.f32.mrb[16].mxu1  ;;  %v3970_v35 = vpop.f32.mrb[18].mxu0 }
 0x17c   : > { %1737 = vrot.lane.b32.xlu1 %v983_v14, %s3531_s21  ;;  %1663 = vrot.lane.b32.xlu0 %v1619_v31, %s3530_s17  ;;  %v3417_v36 = vpop.f32.mrb[17].mxu1  ;;  %v3422_v37 = vpop.f32.mrb[19].mxu0  ;;  %v1628_v8 = vsub.f32 0.0, %v3968_v34 }
 0x17f   : > { %v3974_v39 = vpop.f32.mrb[18].mxu1  ;;  %v3976_v40 = vpop.f32.mrb[20].mxu0 }
 0x180   : > { %1665 = vrot.lane.b32.xlu1 %v1620_v38, %s3530_s17  ;;  %1739 = vrot.lane.b32.xlu0 %v1061_v15, %s3531_s21  ;;  %v3427_v42 = vpop.f32.mrb[19].mxu1  ;;  %v3432_v43 = vpop.f32.mrb[21].mxu0 }
 0x183   : > { %v3980_v44 = vpop.f32.mrb[20].mxu1  ;;  %v3982_v45 = vpop.f32.mrb[22].mxu0 }
 0x184   : > { %1741 = vrot.lane.b32.xlu1 %v1139_v19, %s3531_s21  ;;  %1667 = vrot.lane.b32.xlu0 %v1621_v41, %s3530_s17  ;;  %v3437_v46 = vpop.f32.mrb[21].mxu1  ;;  %v3442_v47 = vpop.f32.mrb[23].mxu0 }
 0x187   : > { %v3986_v49 = vpop.f32.mrb[22].mxu1  ;;  %v3988_v50 = vpop.f32.mrb[24].mxu0 }
 0x188   : > { %1669 = vrot.lane.b32.xlu1 %v1622_v48, %s3530_s17  ;;  %1743 = vrot.lane.b32.xlu0 %v1217_v20, %s3531_s21  ;;  %v3447_v52 = vpop.f32.mrb[23].mxu1  ;;  %v3452_v53 = vpop.f32.mrb[25].mxu0 }
 0x18b   : > { %v3992_v54 = vpop.f32.mrb[24].mxu1  ;;  %v3994_v55 = vpop.f32.mrb[26].mxu0 }
 0x18c   : > { %1745 = vrot.lane.b32.xlu1 %v1295_v24, %s3531_s21  ;;  %1671 = vrot.lane.b32.xlu0 %v1623_v51, %s3530_s17  ;;  %v3457_v56 = vpop.f32.mrb[25].mxu1  ;;  %v3462_v57 = vpop.f32.mrb[27].mxu0 }
 0x18f   : > { %v3998_v59 = vpop.f32.mrb[26].mxu1  ;;  %v4000_v60 = vpop.f32.mrb[28].mxu0 }
 0x190   : > { %1673 = vrot.lane.b32.xlu1 %v1624_v58, %s3530_s17  ;;  %1747 = vrot.lane.b32.xlu0 %v1373_v25, %s3531_s21  ;;  %v3467_v62 = vpop.f32.mrb[27].mxu1  ;;  %v3472_v63 = vpop.f32.mrb[29].mxu0 }
 0x193   : > { %v4004_v0 = vpop.f32.mrb[28].mxu1  ;;  %v4006_v1 = vpop.f32.mrb[30].mxu0 }
 0x194   : > { %1749 = vrot.lane.b32.xlu1 %v1451_v29, %s3531_s21  ;;  %1675 = vrot.lane.b32.xlu0 %v1625_v61, %s3530_s17  ;;  %v3477_v3 = vpop.f32.mrb[29].mxu1  ;;  %v3482_v4 = vpop.f32.mrb[31].mxu0 }
 0x197   : > { %v4011_v6 = vpop.f32.mrb[30].mxu1  ;;  %v4013_v7 = vpop.f32.mrb[32].mxu0 }
 0x198   : > { %1677 = vrot.lane.b32.xlu1 %v1626_v5, %s3530_s17  ;;  %1679 = vrot.lane.b32.xlu0 %v1627_v2, %s3530_s17  ;;  %v3487_v9 = vpop.f32.mrb[31].mxu1  ;;  %v3492_v10 = vpop.f32.mrb[33].mxu0 }
 0x19b   : > { %v4018_v11 = vpop.f32.mrb[32].mxu1  ;;  %v4020_v12 = vpop.f32.mrb[34].mxu0 }
 0x19c   : > { %1681 = vrot.lane.b32.xlu1 %v1628_v8, %s3530_s17  ;;  %1751 = vrot.lane.b32.xlu0 %v3964_v30, %s3531_s21  ;;  %v3497_v13 = vpop.f32.mrb[33].mxu1  ;;  %v3502_v14 = vpop.f32.mrb[35].mxu0 }
 0x19f   : > { %v4025_v15 = vpop.f32.mrb[34].mxu1 }
 0x1a0   : > { %1753 = vrot.lane.b32.xlu1 %v3968_v34, %s3531_s21  ;;  %v3507_v16 = vpop.f32.mrb[35].mxu1 }
 0x1ca   : > { %v1720_v17 = vpop.permute.xlu0 %1719 }
 0x1ce   : > { %v1722_v18 = vpop.permute.xlu1 %1721  ;;  %v1648_v19 = vpop.permute.xlu0 %1647 }
 0x1cf   : > { %v1773_v20 = vsel %vm208_vm2, %v1648_v19, %v1720_v17 }
 0x1d0   : > { %v1860_v21 = vadd.f32 %v3970_v35, %v1773_v20 }
 0x1d2   : > { %3088 = vst.msk [vmem:[%s4034_s24] sm:$0x3] %vm3087_vm3, %v1860_v21  ;;  %v1650_v22 = vpop.permute.xlu1 %1649  ;;  %v1724_v23 = vpop.permute.xlu0 %1723 }
 0x1d3   : > { %v1774_v24 = vsel %vm208_vm2, %v1650_v22, %v1722_v18 }
 0x1d4   : > { %v1932_v25 = vadd.f32 %v3974_v39, %v1774_v24 }
 0x1d6   : > { %3089 = vst.msk [vmem:[%s4034_s24 + $0x2] sm:$0x3] %vm3087_vm3, %v1932_v25  ;;  %v1726_v26 = vpop.permute.xlu1 %1725  ;;  %v1652_v27 = vpop.permute.xlu0 %1651 }
 0x1d7   : > { %v1775_v28 = vsel %vm208_vm2, %v1652_v27, %v1724_v23 }
 0x1d8   : > { %v2004_v29 = vadd.f32 %v3976_v40, %v1775_v28 }
 0x1da   : > { %3090 = vst.msk [vmem:[%s4034_s24 + $0x4] sm:$0x3] %vm3087_vm3, %v2004_v29  ;;  %v1654_v30 = vpop.permute.xlu1 %1653  ;;  %v1728_v31 = vpop.permute.xlu0 %1727 }
 0x1db   : > { %v1776_v32 = vsel %vm208_vm2, %v1654_v30, %v1726_v26 }
 0x1dc   : > { %v2076_v33 = vadd.f32 %v3980_v44, %v1776_v32 }
 0x1de   : > { %3091 = vst.msk [vmem:[%s4034_s24 + $0x6] sm:$0x3] %vm3087_vm3, %v2076_v33  ;;  %v1730_v34 = vpop.permute.xlu1 %1729  ;;  %v1656_v35 = vpop.permute.xlu0 %1655 }
 0x1df   : > { %v1777_v36 = vsel %vm208_vm2, %v1656_v35, %v1728_v31 }
 0x1e0   : > { %v2148_v37 = vadd.f32 %v3982_v45, %v1777_v36 }
 0x1e2   : > { %3092 = vst.msk [vmem:[%s4034_s24 + $0x8] sm:$0x3] %vm3087_vm3, %v2148_v37  ;;  %v1658_v38 = vpop.permute.xlu1 %1657  ;;  %v1732_v39 = vpop.permute.xlu0 %1731 }
 0x1e3   : > { %v1778_v40 = vsel %vm208_vm2, %v1658_v38, %v1730_v34 }
 0x1e4   : > { %v2220_v41 = vadd.f32 %v3986_v49, %v1778_v40 }
 0x1e6   : > { %3093 = vst.msk [vmem:[%s4034_s24 + $0xa] sm:$0x3] %vm3087_vm3, %v2220_v41  ;;  %v1734_v42 = vpop.permute.xlu1 %1733  ;;  %v1660_v43 = vpop.permute.xlu0 %1659 }
 0x1e7   : > { %v1779_v44 = vsel %vm208_vm2, %v1660_v43, %v1732_v39 }
 0x1e8   : > { %v2292_v46 = vadd.f32 %v3988_v50, %v1779_v44 }
 0x1ea   : > { %3094 = vst.msk [vmem:[%s4034_s24 + $0xc] sm:$0x3] %vm3087_vm3, %v2292_v46  ;;  %v1662_v45 = vpop.permute.xlu1 %1661  ;;  %v1736_v47 = vpop.permute.xlu0 %1735 }
 0x1eb   : > { %v1780_v48 = vsel %vm208_vm2, %v1662_v45, %v1734_v42 }
 0x1ec   : > { %v2364_v51 = vadd.f32 %v3992_v54, %v1780_v48 }
 0x1ee   : > { %3095 = vst.msk [vmem:[%s4034_s24 + $0xe] sm:$0x3] %vm3087_vm3, %v2364_v51  ;;  %v1738_v49 = vpop.permute.xlu1 %1737  ;;  %v1664_v52 = vpop.permute.xlu0 %1663 }
 0x1ef   : > { %v1781_v53 = vsel %vm208_vm2, %v1664_v52, %v1736_v47 }
 0x1f0   : > { %v2436_v56 = vadd.f32 %v3994_v55, %v1781_v53 }
 0x1f2   : > { %3096 = vst.msk [vmem:[%s4034_s24 + $0x10] sm:$0x3] %vm3087_vm3, %v2436_v56  ;;  %v1666_v50 = vpop.permute.xlu1 %1665  ;;  %v1740_v57 = vpop.permute.xlu0 %1739 }
 0x1f3   : > { %v1782_v58 = vsel %vm208_vm2, %v1666_v50, %v1738_v49 }
 0x1f4   : > { %v2508_v61 = vadd.f32 %v3998_v59, %v1782_v58 }
 0x1f6   : > { %3097 = vst.msk [vmem:[%s4034_s24 + $0x12] sm:$0x3] %vm3087_vm3, %v2508_v61  ;;  %v1742_v54 = vpop.permute.xlu1 %1741  ;;  %v1668_v62 = vpop.permute.xlu0 %1667 }
 0x1f7   : > { %v1783_v63 = vsel %vm208_vm2, %v1668_v62, %v1740_v57 }
 0x1f8   : > { %v2580_v2 = vadd.f32 %v4000_v60, %v1783_v63 }
 0x1fa   : > { %3098 = vst.msk [vmem:[%s4034_s24 + $0x14] sm:$0x3] %vm3087_vm3, %v2580_v2  ;;  %v1670_v55 = vpop.permute.xlu1 %1669  ;;  %v1744_v3 = vpop.permute.xlu0 %1743 }
 0x1fb   : > { %v1784_v4 = vsel %vm208_vm2, %v1670_v55, %v1742_v54 }
 0x1fc   : > { %v2652_v5 = vadd.f32 %v4004_v0, %v1784_v4 }
 0x1fe   : > { %3099 = vst.msk [vmem:[%s4034_s24 + $0x16] sm:$0x3] %vm3087_vm3, %v2652_v5  ;;  %v1746_v59 = vpop.permute.xlu1 %1745  ;;  %v1672_v8 = vpop.permute.xlu0 %1671 }
 0x1ff   : > { %v1785_v9 = vsel %vm208_vm2, %v1672_v8, %v1744_v3 }
 0x200   : > { %v2724_v10 = vadd.f32 %v4006_v1, %v1785_v9 }
 0x202   : > { %3100 = vst.msk [vmem:[%s4034_s24 + $0x18] sm:$0x3] %vm3087_vm3, %v2724_v10  ;;  %v1674_v60 = vpop.permute.xlu1 %1673  ;;  %v1748_v13 = vpop.permute.xlu0 %1747 }
 0x203   : > { %v1786_v14 = vsel %vm208_vm2, %v1674_v60, %v1746_v59 }
 0x204   : > { %v2796_v16 = vadd.f32 %v4011_v6, %v1786_v14 }
 0x206   : > { %3101 = vst.msk [vmem:[%s4034_s24 + $0x1a] sm:$0x3] %vm3087_vm3, %v2796_v16  ;;  %v1750_v0 = vpop.permute.xlu1 %1749  ;;  %v1676_v17 = vpop.permute.xlu0 %1675 }
 0x207   : > { %v1787_v18 = vsel %vm208_vm2, %v1676_v17, %v1748_v13 }
 0x208   : > { %v2868_v19 = vadd.f32 %v4013_v7, %v1787_v18 }
 0x20a   : > { %3102 = vst.msk [vmem:[%s4034_s24 + $0x1c] sm:$0x3] %vm3087_vm3, %v2868_v19  ;;  %v1678_v1 = vpop.permute.xlu1 %1677  ;;  %v1680_v20 = vpop.permute.xlu0 %1679 }
 0x20b   : > { %v1788_v21 = vsel %vm208_vm2, %v1678_v1, %v1750_v0 }
 0x20c   : > { %v2940_v22 = vadd.f32 %v4018_v11, %v1788_v21 }
 0x20e   : > { %3103 = vst.msk [vmem:[%s4034_s24 + $0x1e] sm:$0x3] %vm3087_vm3, %v2940_v22  ;;  %v1682_v6 = vpop.permute.xlu1 %1681  ;;  %v1752_v23 = vpop.permute.xlu0 %1751 }
 0x20f   : > { %v1789_v24 = vsel %vm208_vm2, %v1680_v20, %v1752_v23 }
 0x210   : > { %v3012_v25 = vadd.f32 %v4020_v12, %v1789_v24 }
 0x212   : > { %3104 = vst.msk [vmem:[%s4034_s24 + $0x20] sm:$0x3] %vm3087_vm3, %v3012_v25  ;;  %v1754_v26 = vpop.permute.xlu1 %1753 }
 0x213   : > { %v1790_v7 = vsel %vm208_vm2, %v1682_v6, %v1754_v26 }
 0x214   : > { %v3084_v27 = vadd.f32 %v4025_v15, %v1790_v7 }
 0x216   : > { %3105 = vst.msk [vmem:[%s4034_s24 + $0x22] sm:$0x3] %vm3087_vm3, %v3084_v27 }
 0x217 PF: > { %s12_s9 = sadd.s32 1, %s3526_s9  }
 0x218   : > { %p9_p4 = scmp.ge.s32.totalorder %s12_s9, 6  }
 0x21a   :  { %11 = sbr.rel (!%p9_p4) target bundleno = 1 (0x1), region = 61 }

</bundles_post_ra>
